<compile_context>
chip_gen: v7x
topology: tpu7x:2x2x1
jax: 0.10.0
libtpu: 0.0.40
codegen_flags: <defaults>
</compile_context>

<pallas_src>
import functools

import jax
import jax.numpy as jnp
import numpy as np
from jax import lax
from jax.experimental import pallas as pl
from jax.experimental.pallas import tpu as pltpu


def _zero_conv_kernel(x_ref, w_ref, o_ref, *, n_batch, c_in, height, width):
    """In-kernel im2col (lane rolls + pad masks) + one MXU matmul per batch.

    x_ref: (N*Ci, H*W)    flattened input, spatial on lanes (lane-dense)
    w_ref: (Co, 9*Ci+1)   folded weights; last column = exp(3*scale)*bias
    o_ref: (N, Co, H*W)   lane-dense output
    """
    m = height * width
    x_all = x_ref[...]                                   # (N*Ci, M)
    in_dtype = x_all.dtype
    pad_val = jnp.array(1.0, dtype=in_dtype)             # F.pad(..., value=1)

    # Boundary masks: lanes whose tap reads the constant-1 pad.
    lane = lax.broadcasted_iota(jnp.int32, (1, m), 1)    # 0 .. M-1
    col = lax.rem(lane, width)
    top = lane < width                                   # h == 0
    bot = lane >= m - width                              # h == H-1
    left = col == 0                                      # w == 0
    right = col == width - 1                             # w == W-1

    # Build the 9 shifted taps once (shared across the batch).  A (dh, dw)
    # spatial shift of the row-major-flattened image is one lane roll by
    # dh*W + dw; every lane where the roll wraps is also a padded lane, so the
    # mask-select with 1.0 makes the wrap harmless.
    taps = []
    for kh in range(3):
        for kw in range(3):
            dh, dw = kh - 1, kw - 1
            s = dh * width + dw
            rolled = x_all if s == 0 else pltpu.roll(x_all, (-s) % m, axis=1)
            parts = []
            if dh == -1:
                parts.append(top)
            if dh == 1:
                parts.append(bot)
            if dw == -1:
                parts.append(left)
            if dw == 1:
                parts.append(right)
            if parts:
                mask = functools.reduce(jnp.logical_or, parts)
                rolled = jnp.where(mask, pad_val, rolled)
            taps.append(rolled)                          # (N*Ci, M)

    ones_row = jnp.ones((1, m), dtype=in_dtype)          # bias row (K = 9*Ci+1)
    w = w_ref[...]                                       # (Co, 9*Ci+1)

    # N is small and static: unrolled loop of full-lane-width MXU matmuls.
    # (For large N, merge batch into the lane axis or use a grid instead.)
    for n in range(n_batch):
        patches = jnp.concatenate(
            [t[n * c_in:(n + 1) * c_in] for t in taps] + [ones_row], axis=0)
        acc = jnp.dot(w, patches, preferred_element_type=jnp.float32)  # (Co, M)
        o_ref[n] = acc.astype(o_ref.dtype)


def zero_conv_layer(x_nchw, weight_oihw, bias, scale_1c11):
    """Pallas implementation of ZeroConvLayer.forward.

    x_nchw:      (N, Cin, H, W)
    weight_oihw: (Cout, Cin, 3, 3)   -- PyTorch Conv2d weight layout
    bias:        (Cout,)
    scale_1c11:  (1, Cout, 1, 1)
    returns:     (N, Cout, H, W)
    """
    N, Ci, H, W = x_nchw.shape
    Co = weight_oihw.shape[0]
    K = 9 * Ci + 1            # 9 taps * Ci channels + bias column
    M = H * W

    # Fold exp(3*scale) and bias into an augmented weight, in f32 (exact), then
    # cast to the input dtype so bf16 inputs take the native bf16 MXU path.
    e = jnp.exp(scale_1c11.reshape(Co).astype(jnp.float32) * 3.0)         # (Co,)
    w_t = jnp.transpose(weight_oihw, (0, 2, 3, 1)).reshape(Co, 9 * Ci)    # K order (kh,kw,ci)
    w_folded = w_t.astype(jnp.float32) * e[:, None]                       # (Co, 9*Ci)
    b_folded = (bias.astype(jnp.float32) * e)[:, None]                    # (Co, 1)
    w_aug = jnp.concatenate([w_folded, b_folded], axis=1).astype(x_nchw.dtype)

    # Free row-major reshape; the kernel builds the im2col matrix in VMEM.
    x_flat = x_nchw.reshape(N * Ci, M)

    kernel = functools.partial(_zero_conv_kernel, n_batch=N, c_in=Ci,
                               height=H, width=W)
    itemsize = jnp.dtype(x_nchw.dtype).itemsize
    out = pl.pallas_call(
        kernel,
        out_shape=jax.ShapeDtypeStruct((N, Co, M), x_nchw.dtype),
        in_specs=[
            pl.BlockSpec(memory_space=pltpu.MemorySpace.VMEM),
            pl.BlockSpec(memory_space=pltpu.MemorySpace.VMEM),
        ],
        out_specs=pl.BlockSpec(memory_space=pltpu.MemorySpace.VMEM),
        cost_estimate=pl.CostEstimate(
            flops=2 * N * Co * K * M,
            transcendentals=0,
            bytes_accessed=(N * Ci * M * itemsize
                            + Co * K * itemsize
                            + N * Co * M * itemsize),
        ),
    )(x_flat, w_aug)

    return out.reshape(N, Co, H, W)


def _reference(x_nchw, weight_oihw, bias, scale_1c11):
    """Pure-JAX reference matching the PyTorch forward exactly."""
    xp = jnp.pad(x_nchw, ((0, 0), (0, 0), (1, 1), (1, 1)), constant_values=1.0)
    out = lax.conv_general_dilated(
        xp, weight_oihw, window_strides=(1, 1), padding="VALID",
        dimension_numbers=("NCHW", "OIHW", "NCHW"))
    out = out + bias.reshape(1, -1, 1, 1)
    out = out * jnp.exp(scale_1c11 * 3.0)
    return out


if __name__ == "__main__":
    N, Ci, H, W = 2, 4, 16, 16
    Co = 8

    key = jax.random.PRNGKey(0)
    kx, kw, kb, ks = jax.random.split(key, 4)
    x = jax.random.normal(kx, (N, Ci, H, W), jnp.float32)

    # NOTE: the module's __init__ zero-initializes conv.weight, conv.bias and
    # scale (which would make the output identically zero).  We use small
    # deterministic nonzero values so the forward-pass kernel is actually
    # exercised; the forward semantics are identical either way.
    weight = 0.1 * jax.random.normal(kw, (Co, Ci, 3, 3), jnp.float32)
    bias = 0.1 * jax.random.normal(kb, (Co,), jnp.float32)
    scale = 0.1 * jax.random.normal(ks, (1, Co, 1, 1), jnp.float32)

    fn = jax.jit(zero_conv_layer)
    out = jax.block_until_ready(fn(x, weight, bias, scale))

    ref = jax.block_until_ready(_reference(x, weight, bias, scale))
    assert out.shape == (N, Co, H, W), out.shape
    np.testing.assert_allclose(np.asarray(out), np.asarray(ref),
                               rtol=1e-5, atol=1e-5)
    print("KERNEL_OK")
</pallas_src>

<mosaic_0001>
module attributes {stable_mosaic.version = 11 : i64} {
  func.func @_zero_conv_kernel(%arg0: memref<8x256xf32, #tpu.memory_space<vmem>>, %arg1: memref<8x37xf32, #tpu.memory_space<vmem>>, %arg2: memref<2x8x256xf32, #tpu.memory_space<vmem>>) attributes {dimension_semantics = [], scalar_prefetch = 0 : i64, scratch_operands = 0 : i64, tpu.core_type = #tpu.core_type<tc>} {
    %c0 = arith.constant 0 : index
    %c0_0 = arith.constant 0 : index
    %0 = vector.load %arg0[%c0, %c0_0] : memref<8x256xf32, #tpu.memory_space<vmem>>, vector<8x256xf32>
    %1 = tpu.iota {dimensions = array<i32: 1>} : vector<1x256xi32>
    %c16_i32 = arith.constant 16 : i32
    %2 = vector.broadcast %c16_i32 : i32 to vector<1x256xi32>
    %3 = arith.remsi %1, %2 : vector<1x256xi32>
    %c16_i32_1 = arith.constant 16 : i32
    %4 = vector.broadcast %c16_i32_1 : i32 to vector<1x256xi32>
    %5 = arith.cmpi slt, %1, %4 : vector<1x256xi32>
    %c240_i32 = arith.constant 240 : i32
    %6 = vector.broadcast %c240_i32 : i32 to vector<1x256xi32>
    %7 = arith.cmpi sge, %1, %6 : vector<1x256xi32>
    %c0_i32 = arith.constant 0 : i32
    %8 = vector.broadcast %c0_i32 : i32 to vector<1x256xi32>
    %9 = arith.cmpi eq, %3, %8 : vector<1x256xi32>
    %c15_i32 = arith.constant 15 : i32
    %10 = vector.broadcast %c15_i32 : i32 to vector<1x256xi32>
    %11 = arith.cmpi eq, %3, %10 : vector<1x256xi32>
    %c17_i32 = arith.constant 17 : i32
    %12 = tpu.dynamic_rotate %0 by %c17_i32 dim 1 : vector<8x256xf32>, i32 -> vector<8x256xf32>
    %13 = arith.ori %5, %9 : vector<1x256xi1>
    %cst = arith.constant 1.000000e+00 : f32
    %14 = vector.shape_cast %13 : vector<1x256xi1> to vector<1x256xi1>
    %15 = vector.broadcast %14 : vector<1x256xi1> to vector<8x256xi1>
    %16 = vector.broadcast %cst : f32 to vector<8x256xf32>
    %17 = arith.select %15, %16, %12 : vector<8x256xi1>, vector<8x256xf32>
    %c16_i32_2 = arith.constant 16 : i32
    %18 = tpu.dynamic_rotate %0 by %c16_i32_2 dim 1 : vector<8x256xf32>, i32 -> vector<8x256xf32>
    %cst_3 = arith.constant 1.000000e+00 : f32
    %19 = vector.shape_cast %5 : vector<1x256xi1> to vector<1x256xi1>
    %20 = vector.broadcast %19 : vector<1x256xi1> to vector<8x256xi1>
    %21 = vector.broadcast %cst_3 : f32 to vector<8x256xf32>
    %22 = arith.select %20, %21, %18 : vector<8x256xi1>, vector<8x256xf32>
    %c15_i32_4 = arith.constant 15 : i32
    %23 = tpu.dynamic_rotate %0 by %c15_i32_4 dim 1 : vector<8x256xf32>, i32 -> vector<8x256xf32>
    %24 = arith.ori %5, %11 : vector<1x256xi1>
    %cst_5 = arith.constant 1.000000e+00 : f32
    %25 = vector.shape_cast %24 : vector<1x256xi1> to vector<1x256xi1>
    %26 = vector.broadcast %25 : vector<1x256xi1> to vector<8x256xi1>
    %27 = vector.broadcast %cst_5 : f32 to vector<8x256xf32>
    %28 = arith.select %26, %27, %23 : vector<8x256xi1>, vector<8x256xf32>
    %c1_i32 = arith.constant 1 : i32
    %29 = tpu.dynamic_rotate %0 by %c1_i32 dim 1 : vector<8x256xf32>, i32 -> vector<8x256xf32>
    %cst_6 = arith.constant 1.000000e+00 : f32
    %30 = vector.shape_cast %9 : vector<1x256xi1> to vector<1x256xi1>
    %31 = vector.broadcast %30 : vector<1x256xi1> to vector<8x256xi1>
    %32 = vector.broadcast %cst_6 : f32 to vector<8x256xf32>
    %33 = arith.select %31, %32, %29 : vector<8x256xi1>, vector<8x256xf32>
    %c255_i32 = arith.constant 255 : i32
    %34 = tpu.dynamic_rotate %0 by %c255_i32 dim 1 : vector<8x256xf32>, i32 -> vector<8x256xf32>
    %cst_7 = arith.constant 1.000000e+00 : f32
    %35 = vector.shape_cast %11 : vector<1x256xi1> to vector<1x256xi1>
    %36 = vector.broadcast %35 : vector<1x256xi1> to vector<8x256xi1>
    %37 = vector.broadcast %cst_7 : f32 to vector<8x256xf32>
    %38 = arith.select %36, %37, %34 : vector<8x256xi1>, vector<8x256xf32>
    %c241_i32 = arith.constant 241 : i32
    %39 = tpu.dynamic_rotate %0 by %c241_i32 dim 1 : vector<8x256xf32>, i32 -> vector<8x256xf32>
    %40 = arith.ori %7, %9 : vector<1x256xi1>
    %cst_8 = arith.constant 1.000000e+00 : f32
    %41 = vector.shape_cast %40 : vector<1x256xi1> to vector<1x256xi1>
    %42 = vector.broadcast %41 : vector<1x256xi1> to vector<8x256xi1>
    %43 = vector.broadcast %cst_8 : f32 to vector<8x256xf32>
    %44 = arith.select %42, %43, %39 : vector<8x256xi1>, vector<8x256xf32>
    %c240_i32_9 = arith.constant 240 : i32
    %45 = tpu.dynamic_rotate %0 by %c240_i32_9 dim 1 : vector<8x256xf32>, i32 -> vector<8x256xf32>
    %cst_10 = arith.constant 1.000000e+00 : f32
    %46 = vector.shape_cast %7 : vector<1x256xi1> to vector<1x256xi1>
    %47 = vector.broadcast %46 : vector<1x256xi1> to vector<8x256xi1>
    %48 = vector.broadcast %cst_10 : f32 to vector<8x256xf32>
    %49 = arith.select %47, %48, %45 : vector<8x256xi1>, vector<8x256xf32>
    %c239_i32 = arith.constant 239 : i32
    %50 = tpu.dynamic_rotate %0 by %c239_i32 dim 1 : vector<8x256xf32>, i32 -> vector<8x256xf32>
    %51 = arith.ori %7, %11 : vector<1x256xi1>
    %cst_11 = arith.constant 1.000000e+00 : f32
    %52 = vector.shape_cast %51 : vector<1x256xi1> to vector<1x256xi1>
    %53 = vector.broadcast %52 : vector<1x256xi1> to vector<8x256xi1>
    %54 = vector.broadcast %cst_11 : f32 to vector<8x256xf32>
    %55 = arith.select %53, %54, %50 : vector<8x256xi1>, vector<8x256xf32>
    %cst_12 = arith.constant 1.000000e+00 : f32
    %56 = vector.broadcast %cst_12 : f32 to vector<1x256xf32>
    %c0_13 = arith.constant 0 : index
    %c0_14 = arith.constant 0 : index
    %57 = vector.load %arg1[%c0_13, %c0_14] : memref<8x37xf32, #tpu.memory_space<vmem>>, vector<8x37xf32>
    %58 = vector.extract_strided_slice %17 {offsets = [0, 0], sizes = [4, 256], strides = [1, 1]} : vector<8x256xf32> to vector<4x256xf32>
    %59 = vector.extract_strided_slice %22 {offsets = [0, 0], sizes = [4, 256], strides = [1, 1]} : vector<8x256xf32> to vector<4x256xf32>
    %60 = vector.extract_strided_slice %28 {offsets = [0, 0], sizes = [4, 256], strides = [1, 1]} : vector<8x256xf32> to vector<4x256xf32>
    %61 = vector.extract_strided_slice %33 {offsets = [0, 0], sizes = [4, 256], strides = [1, 1]} : vector<8x256xf32> to vector<4x256xf32>
    %62 = vector.extract_strided_slice %0 {offsets = [0, 0], sizes = [4, 256], strides = [1, 1]} : vector<8x256xf32> to vector<4x256xf32>
    %63 = vector.extract_strided_slice %38 {offsets = [0, 0], sizes = [4, 256], strides = [1, 1]} : vector<8x256xf32> to vector<4x256xf32>
    %64 = vector.extract_strided_slice %44 {offsets = [0, 0], sizes = [4, 256], strides = [1, 1]} : vector<8x256xf32> to vector<4x256xf32>
    %65 = vector.extract_strided_slice %49 {offsets = [0, 0], sizes = [4, 256], strides = [1, 1]} : vector<8x256xf32> to vector<4x256xf32>
    %66 = vector.extract_strided_slice %55 {offsets = [0, 0], sizes = [4, 256], strides = [1, 1]} : vector<8x256xf32> to vector<4x256xf32>
    %67 = tpu.concatenate %58, %59, %60, %61, %62, %63, %64, %65, %66, %56 in 0 : vector<4x256xf32>, vector<4x256xf32>, vector<4x256xf32>, vector<4x256xf32>, vector<4x256xf32>, vector<4x256xf32>, vector<4x256xf32>, vector<4x256xf32>, vector<4x256xf32>, vector<1x256xf32> -> vector<37x256xf32>
    %cst_15 = arith.constant dense<0.000000e+00> : vector<8x256xf32>
    %68 = tpu.matmul %57, %67, %cst_15 {dimension_numbers = #tpu.dot_dimension_numbers<[1], [0], [0], [1], [0, 0, 1, 1], [], []>} : vector<8x37xf32>, vector<37x256xf32>, vector<8x256xf32> -> vector<8x256xf32>
    %c0_16 = arith.constant 0 : index
    %c0_17 = arith.constant 0 : index
    %c0_18 = arith.constant 0 : index
    %69 = vector.load %arg2[%c0_16, %c0_17, %c0_18] : memref<2x8x256xf32, #tpu.memory_space<vmem>>, vector<1x8x256xf32>
    %70 = vector.shape_cast %69 : vector<1x8x256xf32> to vector<8x256xf32>
    %71 = vector.shape_cast %68 : vector<8x256xf32> to vector<1x8x256xf32>
    tpu.vector_store %arg2[%c0_16, %c0_17, %c0_18], %71 {strides = array<i32>} : memref<2x8x256xf32, #tpu.memory_space<vmem>>, vector<1x8x256xf32>,
    %72 = vector.extract_strided_slice %17 {offsets = [4, 0], sizes = [4, 256], strides = [1, 1]} : vector<8x256xf32> to vector<4x256xf32>
    %73 = vector.extract_strided_slice %22 {offsets = [4, 0], sizes = [4, 256], strides = [1, 1]} : vector<8x256xf32> to vector<4x256xf32>
    %74 = vector.extract_strided_slice %28 {offsets = [4, 0], sizes = [4, 256], strides = [1, 1]} : vector<8x256xf32> to vector<4x256xf32>
    %75 = vector.extract_strided_slice %33 {offsets = [4, 0], sizes = [4, 256], strides = [1, 1]} : vector<8x256xf32> to vector<4x256xf32>
    %76 = vector.extract_strided_slice %0 {offsets = [4, 0], sizes = [4, 256], strides = [1, 1]} : vector<8x256xf32> to vector<4x256xf32>
    %77 = vector.extract_strided_slice %38 {offsets = [4, 0], sizes = [4, 256], strides = [1, 1]} : vector<8x256xf32> to vector<4x256xf32>
    %78 = vector.extract_strided_slice %44 {offsets = [4, 0], sizes = [4, 256], strides = [1, 1]} : vector<8x256xf32> to vector<4x256xf32>
    %79 = vector.extract_strided_slice %49 {offsets = [4, 0], sizes = [4, 256], strides = [1, 1]} : vector<8x256xf32> to vector<4x256xf32>
    %80 = vector.extract_strided_slice %55 {offsets = [4, 0], sizes = [4, 256], strides = [1, 1]} : vector<8x256xf32> to vector<4x256xf32>
    %81 = tpu.concatenate %72, %73, %74, %75, %76, %77, %78, %79, %80, %56 in 0 : vector<4x256xf32>, vector<4x256xf32>, vector<4x256xf32>, vector<4x256xf32>, vector<4x256xf32>, vector<4x256xf32>, vector<4x256xf32>, vector<4x256xf32>, vector<4x256xf32>, vector<1x256xf32> -> vector<37x256xf32>
    %cst_19 = arith.constant dense<0.000000e+00> : vector<8x256xf32>
    %82 = tpu.matmul %57, %81, %cst_19 {dimension_numbers = #tpu.dot_dimension_numbers<[1], [0], [0], [1], [0, 0, 1, 1], [], []>} : vector<8x37xf32>, vector<37x256xf32>, vector<8x256xf32> -> vector<8x256xf32>
    %c1 = arith.constant 1 : index
    %c0_20 = arith.constant 0 : index
    %c0_21 = arith.constant 0 : index
    %83 = vector.load %arg2[%c1, %c0_20, %c0_21] : memref<2x8x256xf32, #tpu.memory_space<vmem>>, vector<1x8x256xf32>
    %84 = vector.shape_cast %83 : vector<1x8x256xf32> to vector<8x256xf32>
    %85 = vector.shape_cast %82 : vector<8x256xf32> to vector<1x8x256xf32>
    tpu.vector_store %arg2[%c1, %c0_20, %c0_21], %85 {strides = array<i32>} : memref<2x8x256xf32, #tpu.memory_space<vmem>>, vector<1x8x256xf32>,
    return
  }
}

</mosaic_0001>

<bundles_post_ra>
// kernel: zero_conv_layer.1
= control target key start
LH: loop header
LB: loop body
LE: loop exit
PB: predicated region body
PF: predicated region fallthrough
CT: control target
= control target key end

     0   :  { %s461_s13 = smov 1   ;;  %s462_s14 = smov 17   ;;  %v469_v3 = vmov 0.0   ;;  %v13_v4 = vlaneseq  ;;  %vm174_vm3 = vcmask 1043456   ;;  %s646_s0 = inlined_call_operand.vmem [shape: f32[8,256], index: 0, kind: input, shape index: {}]   ;;  %s647_s1 = inlined_call_operand.vmem [shape: f32[8,37], index: 1, kind: input, shape index: {}]   ;;  %s648_s2 = inlined_call_operand.vmem [shape: f32[2,8,256], index: 2, kind: output, shape index: {}]  }
   0x1   :  { %v488_v0 = vld [vmem:[%s646_s0] sm:$0xff]  ;;  %v493_v1 = vld [vmem:[%s646_s0 + $0x8] sm:$0xff]  ;;  %s463_s15 = smov 16   ;;  %s464_s16 = smov 15   ;;  %379 = vmatprep.mubr.f32.mxu1 %v469_v3  ;;  %260 = vmatprep.mubr.f32.mxu0 %v469_v3 }
   0x2   :  { %v436_v2 = vpack.i.bf16 %v493_v1, %v488_v0  ;;  %s465_s17 = smov 127   ;;  %s466_s18 = smov 113   ;;  %v499_v5 = vand.u32 127, %v13_v4  ;;  %v284_v19 = vrot.slane %v493_v1, 4  ;;  %v283_v20 = vrot.slane %v488_v0, 4 }
   0x3   :  { %s467_s19 = smov 112   ;;  %s468_s20 = smov 111  }
   0x4   :  { %437 = vrot.lane.b32.xlu1 %v436_v2, %s461_s13  ;;  %427 = vrot.lane.b32.xlu0 %v436_v2, %s462_s14  ;;  %v502_v6 = vadd.s32 128, %v499_v5  ;;  %v20_v7 = vand.u32 15, %v499_v5  ;;  %vm30_vm1 = vcmp.lt.s32.totalorder %v499_v5, 16  ;;  %vm84_vm2 = vcmp.lt.s32.totalorder %v499_v5, 1 }
   0x5   :  { %vm97_vm4 = vcmp.lt.s32.totalorder %v499_v5, 127  ;;  %vm110_vm5 = vcmp.lt.s32.totalorder %v499_v5, 113  ;;  %vm42_vm7 = vcmp.lt.s32.totalorder %v499_v5, 17  ;;  %vm69_vm8 = vcmp.lt.s32.totalorder %v499_v5, 15 }
   0x6   :  { %v27_v8 = vand.u32 15, %v502_v6  ;;  %vm506_vm0 = vcmp.eq.s32.totalorder %v20_v7, 0  ;;  %vm520_vm9 = vcmp.eq.s32.totalorder %v20_v7, 15  ;;  %vm33_vm12 = vcmp.ge.s32.totalorder %v502_v6, 240 }
   0x7   :  { %vm45_vm10 = vmor %vm30_vm1, %vm506_vm0  ;;  %vm125_vm13 = vcmp.lt.s32.totalorder %v499_v5, 112  ;;  %vm138_vm15 = vcmp.lt.s32.totalorder %v499_v5, 111 }
   0x8   :  { %442 = vrot.lane.b32.xlu1 %v436_v2, %s463_s15  ;;  %432 = vrot.lane.b32.xlu0 %v436_v2, %s464_s16  ;;  %vm514_vm6 = vcmp.eq.s32.totalorder %v27_v8, 0  ;;  %vm528_vm11 = vcmp.eq.s32.totalorder %v27_v8, 15  ;;  %vm72_vm14 = vmor %vm30_vm1, %vm520_vm9 }
   0xc   :  { %447 = vrot.lane.b32.xlu0 %v436_v2, %s465_s17  ;;  %452 = vrot.lane.b32.xlu1 %v436_v2, %s466_s18 }
  0x10   :  { %457 = vrot.lane.b32.xlu0 %v436_v2, %s467_s19  ;;  %134 = vrot.lane.b32.xlu1 %v488_v0, %s468_s20 }
  0x14   :  { %136 = vrot.lane.b32.xlu0 %v493_v1, %s468_s20 }
  0x76   :  { %v438_v10 = vpop.permute.xlu1 %437  ;;  %v428_v11 = vpop.permute.xlu0 %427 }
  0x77   :  { %v440_v14 = vunpack.i.h.bf16 %v438_v10  ;;  %v439_v15 = vunpack.i.l.bf16 %v438_v10  ;;  %v430_v16 = vunpack.i.h.bf16 %v428_v11  ;;  %v429_v17 = vunpack.i.l.bf16 %v428_v11 }
  0x79   :  { %v85_v21 = vsel %vm84_vm2, %v439_v15, %v440_v14  ;;  %v86_v22 = vsel %vm84_vm2, %v440_v14, %v439_v15  ;;  %v43_v23 = vsel %vm42_vm7, %v429_v17, %v430_v16  ;;  %v44_v24 = vsel %vm42_vm7, %v430_v16, %v429_v17 }
  0x7a   :  { %v541_v25 = vsel %vm506_vm0, 1.0, %v86_v22  ;;  %v443_v26 = vpop.permute.xlu1 %442  ;;  %v433_v27 = vpop.permute.xlu0 %432  ;;  %v52_v28 = vsel %vm514_vm6, 1.0, %v43_v23  ;;  %v92_v29 = vsel %vm514_vm6, 1.0, %v85_v21  ;;  %v51_v30 = vsel %vm45_vm10, 1.0, %v44_v24 }
  0x7b   :  { %v445_v31 = vunpack.i.h.bf16 %v443_v26  ;;  %v444_v32 = vunpack.i.l.bf16 %v443_v26  ;;  %v435_v33 = vunpack.i.h.bf16 %v433_v27  ;;  %v434_v34 = vunpack.i.l.bf16 %v433_v27 }
  0x7c   :  { %v159_v35 = vrot.slane %v92_v29, 4  ;;  %v272_v36 = vrot.slane %v52_v28, 4  ;;  %v158_v37 = vrot.slane %v541_v25, 4  ;;  %v271_v38 = vrot.slane %v51_v30, 4 }
  0x7d   :  { %v57_v39 = vsel %vm30_vm1, %v444_v32, %v445_v31  ;;  %v58_v40 = vsel %vm30_vm1, %v445_v31, %v444_v32  ;;  %v70_v41 = vsel %vm69_vm8, %v434_v34, %v435_v33  ;;  %v71_v42 = vsel %vm69_vm8, %v435_v33, %v434_v34 }
  0x7e   :  { %v63_v43 = vsel %vm30_vm1, 1.0, %v58_v40  ;;  %v448_v44 = vpop.permute.xlu0 %447  ;;  %v453_v45 = vpop.permute.xlu1 %452  ;;  %v79_v46 = vsel %vm528_vm11, 1.0, %v70_v41  ;;  %v153_v47 = vrot.slane %v57_v39, 4  ;;  %v78_v48 = vsel %vm72_vm14, 1.0, %v71_v42  ;;  %vm114_vm1 = vmor %vm33_vm12, %vm514_vm6 }
  0x7f   :  { %v450_v49 = vunpack.i.h.bf16 %v448_v44  ;;  %v449_v50 = vunpack.i.l.bf16 %v448_v44  ;;  %v455_v51 = vunpack.i.h.bf16 %v453_v45  ;;  %v454_v52 = vunpack.i.l.bf16 %v453_v45 }
  0x80   :  { %v176_v53 = vsel %vm174_vm3, %v52_v28, %v153_v47  ;;  %v178_v54 = vsel %vm174_vm3, %v79_v46, %v159_v35  ;;  %v278_v55 = vrot.slane %v79_v46, 4  ;;  %v152_v56 = vrot.slane %v63_v43, 4 }
  0x81   :  { %v98_v57 = vsel %vm97_vm4, %v449_v50, %v450_v49  ;;  %v99_v58 = vsel %vm97_vm4, %v450_v49, %v449_v50  ;;  %v111_v59 = vsel %vm110_vm5, %v454_v52, %v455_v51  ;;  %v112_v60 = vsel %vm110_vm5, %v455_v51, %v454_v52 }
  0x82   :  { %v119_v61 = vsel %vm506_vm0, 1.0, %v111_v59  ;;  %v458_v62 = vpop.permute.xlu0 %457  ;;  %v401_v63 = vpack.c.bf16 %v178_v54, %v176_v53  ;;  %v175_v2 = vsel %vm174_vm3, %v51_v30, %v152_v56  ;;  %v177_v3 = vsel %vm174_vm3, %v78_v48, %v158_v37  ;;  %v135_v16 = vpop.permute.xlu1 %134  ;;  %vm142_vm0 = vmor %vm33_vm12, %vm528_vm11 }
  0x83   :  { %v289_v4 = vrot.slane %v119_v61, 4  ;;  %v460_v7 = vunpack.i.h.bf16 %v458_v62  ;;  %v459_v8 = vunpack.i.l.bf16 %v458_v62  ;;  %v403_v10 = vpack.c.bf16 %v177_v3, %v175_v2 }
  0x84   :  { %402 = vmatprep.subr.bf16.mxu0 %v401_v63  ;;  %v277_v11 = vrot.slane %v78_v48, 4  ;;  %v300_v9 = vsel %vm174_vm3, %v272_v36, %v57_v39  ;;  %v302_v14 = vsel %vm174_vm3, %v278_v55, %v92_v29  ;;  %v299_v15 = vsel %vm174_vm3, %v271_v38, %v63_v43 }
  0x85   :  { %v126_v17 = vsel %vm125_vm13, %v459_v8, %v460_v7  ;;  %v127_v12 = vsel %vm125_vm13, %v460_v7, %v459_v8  ;;  %404 = vmatpush1.bf16.msra.mxu0 %v403_v10  ;;  %v409_v21 = vpack.c.bf16 %v302_v14, %v300_v9  ;;  %v120_v22 = vsel %vm114_vm1, 1.0, %v112_v60 }
  0x86   :  { %v170_v23 = vrot.slane %v126_v17, 4  ;;  %v301_v24 = vsel %vm174_vm3, %v277_v11, %v541_v25  ;;  %v137_v26 = vpop.permute.xlu0 %136  ;;  %v105_v27 = vsel %vm528_vm11, 1.0, %v99_v58  ;;  %v133_v28 = vsel %vm33_vm12, 1.0, %v127_v12 }
  0x87   :  { %410 = vmatprep.subr.bf16.mxu1 %v409_v21  ;;  %v411_v29 = vpack.c.bf16 %v301_v24, %v299_v15  ;;  %v139_v30 = vsel %vm138_vm15, %v135_v16, %v137_v26  ;;  %v140_v31 = vsel %vm138_vm15, %v137_v26, %v135_v16  ;;  %v165_v32 = vrot.slane %v105_v27, 4 }
  0x88   :  { %v147_v33 = vsel %vm520_vm9, 1.0, %v139_v30  ;;  %v148_v25 = vsel %vm142_vm0, 1.0, %v140_v31  ;;  %v171_v34 = vrot.slane %v133_v28, 4  ;;  %v290_v35 = vrot.slane %v120_v22, 4 }
  0x89   :  { %412 = vmatpush1.bf16.msra.mxu1 %v411_v29  ;;  %v295_v18 = vrot.slane %v147_v33, 4  ;;  %v296_v36 = vrot.slane %v148_v25, 4  ;;  %v104_v6 = vsel %vm520_vm9, 1.0, %v98_v57  ;;  %vm189_vm2 = vcmask 1044480  }
  0x8a   :  { %v304_v37 = vsel %vm174_vm3, %v284_v19, %v105_v27  ;;  %v306_v5 = vsel %vm174_vm3, %v290_v35, %v133_v28  ;;  %v164_v38 = vrot.slane %v104_v6, 4  ;;  %v305_v39 = vsel %vm174_vm3, %v289_v4, %v126_v17 }
  0x8b   :  { %v413_v40 = vpack.c.bf16 %v306_v5, %v304_v37  ;;  %v303_v41 = vsel %vm174_vm3, %v283_v20, %v104_v6  ;;  %v180_v42 = vsel %vm174_vm3, %v493_v1, %v165_v32  ;;  %v182_v13 = vsel %vm174_vm3, %v120_v22, %v171_v34 }
  0x8c   :  { %v415_v43 = vpack.c.bf16 %v305_v39, %v303_v41  ;;  %v405_v44 = vpack.c.bf16 %v182_v13, %v180_v42  ;;  %v179_v19 = vsel %vm174_vm3, %v488_v0, %v164_v38  ;;  %v181_v45 = vsel %vm174_vm3, %v119_v61, %v170_v23  ;;  %v149_v0 = vld [vmem:[%s647_s1] sm:$0xff] }
  0x8d   :  { %414 = vmatprep.subr.bf16.mxu1 %v413_v40  ;;  %v407_v46 = vpack.c.bf16 %v181_v45, %v179_v19  ;;  %v184_v47 = vsel %vm174_vm3, %v148_v25, 1.0  ;;  %v308_v48 = vsel %vm174_vm3, %v296_v36, 1.0  ;;  %v307_v1 = vsel %vm174_vm3, %v295_v18, 1.0 }
  0x8e   :  { %416 = vmatpush1.bf16.msra.mxu1 %v415_v43  ;;  %406 = vmatprep.subr.bf16.mxu0 %v405_v44  ;;  %vm185_vm4 = vcmask 302080   ;;  %v183_v20 = vsel %vm174_vm3, %v147_v33, 1.0 }
  0x8f   :  { %408 = vmatpush1.bf16.msra.mxu0 %v407_v46  ;;  %396 = vmatprep.subr.msk.mxu1 %vm189_vm2, %v308_v48 }
  0x90   :  { %393 = vmatprep.subr.msk.mxu0 %vm189_vm2, %v184_v47 }
  0x92   :  { %397 = vmatpush1.msk.msra.mxu1 %vm189_vm2, %v307_v1 }
  0x93   :  { %394 = vmatpush1.msk.msra.mxu0 %vm189_vm2, %v183_v20  ;;  %398 = vmatmul.mubr.msk.f32.vlgmr.msra.gmra.mrb[0].mxu1 %vm185_vm4, %v149_v0 }
  0x94   :  { %395 = vmatmul.mubr.msk.f32.vlgmr.msra.gmra.mrb[0].mxu0 %vm185_vm4, %v149_v0 }
 0x166   :  { %v381_v49 = vpop.f32.mrb[0].mxu1 }
 0x167   :  { %399 = vst [vmem:[%s648_s2 + $0x10] sm:$0xff] %v381_v49  ;;  %v262_v50 = vpop.f32.mrb[0].mxu0  ;;  %v383_v51 = vpop.f32.mrb[1].mxu1 }
 0x168   :  { %267 = vst [vmem:[%s648_s2] sm:$0xff] %v262_v50  ;;  %400 = vst [vmem:[%s648_s2 + $0x18] sm:$0xff] %v383_v51  ;;  %v264_v52 = vpop.f32.mrb[1].mxu0 }
 0x169   :  { %268 = vst [vmem:[%s648_s2 + $0x8] sm:$0xff] %v264_v52 }

</bundles_post_ra>
